<compile_context>
chip_gen: v6e
topology: v6e:2x2x1
jax: 0.10.0
libtpu: 0.0.40
codegen_flags: <defaults>
</compile_context>

<pallas_src>
import functools
import math

import jax
import jax.numpy as jnp
from jax.experimental import pallas as pl
from jax.experimental.pallas import tpu as pltpu

_LANE = 128
_NEG_INF = -1e30


def _round_up(x, m):
    return ((x + m - 1) // m) * m


def _pad2(a, rows, cols, dtype):
    r, c = a.shape
    return jnp.pad(a, ((0, rows - r), (0, cols - c))).astype(dtype)


def _vmem_limit_bytes(need_bytes):
    """Generation-aware scoped-VMEM limit: real need (+25%) clamped to ~75% of
    physical VMEM (64 MiB per TC on v7x, 128 MiB on v5e/v6e)."""
    try:
        cap = int(pltpu.get_tpu_info().vmem_capacity_bytes)
    except Exception:  # conservative fallback if the query is unavailable
        cap = 64 * 1024 * 1024
    budget = (cap * 3) // 4
    want = max(int(need_bytes) * 5 // 4, 32 * 1024 * 1024)
    return int(min(want, budget))


# ----------------------------------------------------------------------------
# Kernel A: support = h @ W  (computed once per layer, row-tiled)
# ----------------------------------------------------------------------------
def _support_kernel(h_ref, w_ref, o_ref):
    # bf16 operands, f32 accumulation on the MXU, single bf16 rounding on store.
    o_ref[...] = jnp.dot(h_ref[...], w_ref[...],
                         preferred_element_type=jnp.float32).astype(o_ref.dtype)


def _feature_matmul(h_p, w_p, *, tm):
    n_pad, fin_p = h_p.shape
    fout_p = w_p.shape[1]
    bf16 = 2
    need = (2 * tm * fin_p * bf16          # h row tile, double buffered
            + 2 * fin_p * fout_p * bf16    # resident weights
            + 2 * tm * fout_p * bf16)      # output tile
    return pl.pallas_call(
        _support_kernel,
        out_shape=jax.ShapeDtypeStruct((n_pad, fout_p), jnp.bfloat16),
        grid_spec=pltpu.PrefetchScalarGridSpec(
            num_scalar_prefetch=0,
            grid=(n_pad // tm,),
            in_specs=[
                pl.BlockSpec((tm, fin_p), lambda i: (i, 0)),       # h row tile
                pl.BlockSpec((fin_p, fout_p), lambda i: (0, 0)),   # W resident
            ],
            out_specs=pl.BlockSpec((tm, fout_p), lambda i: (i, 0)),
        ),
        compiler_params=pltpu.CompilerParams(
            dimension_semantics=("parallel",),
            vmem_limit_bytes=_vmem_limit_bytes(need),
        ),
    )(h_p, w_p)


# ----------------------------------------------------------------------------
# Kernel B: out = epilogue(adj @ support + b)   (row tiles x K-reduction tiles)
# ----------------------------------------------------------------------------
def _aggregate_kernel(nz_ref, adj_ref, s_ref, b_ref, o_ref, acc_ref,
                      *, epilogue, nclass, tk, support_resident):
    i = pl.program_id(0)
    k = pl.program_id(1)

    @pl.when(k == 0)
    def _init():
        acc_ref[...] = jnp.zeros_like(acc_ref)

    # Block sparsity: skip the MXU pass + accumulator RMW for all-zero adj tiles.
    @pl.when(nz_ref[i, k] != 0)
    def _accumulate():
        if support_resident:
            off = pl.multiple_of(k * tk, tk)
            s = s_ref[pl.ds(off, tk), :]
        else:
            s = s_ref[...]
        acc_ref[...] += jnp.dot(adj_ref[...], s,
                                preferred_element_type=jnp.float32)

    @pl.when(k == pl.num_programs(1) - 1)
    def _finalize():
        out = acc_ref[...] + b_ref[...]           # f32 epilogue, bias added once
        if epilogue == "relu":
            o_ref[...] = jnp.maximum(out, 0.0).astype(o_ref.dtype)
        else:  # "log_softmax": mask padded class lanes, then normalize
            col = jax.lax.broadcasted_iota(jnp.int32, out.shape, 1)
            out = jnp.where(col < nclass, out, _NEG_INF)
            m = jnp.max(out, axis=1, keepdims=True)
            z = out - m
            lse = jnp.log(jnp.sum(jnp.exp(z), axis=1, keepdims=True))
            o_ref[...] = (z - lse).astype(o_ref.dtype)


def _aggregate(nz_tiles, adj_p, support, b_p, *, epilogue, nclass, tm, tk,
               out_dtype):
    n_pad = adj_p.shape[0]
    fout_p = support.shape[1]
    grid = (n_pad // tm, n_pad // tk)

    # Keep the (N, fout) support matrix fully VMEM-resident when small enough;
    # otherwise stream (tk, fout) K-slices per grid step.
    support_resident = n_pad * fout_p * 2 <= 8 * 1024 * 1024
    if support_resident:
        s_spec = pl.BlockSpec((n_pad, fout_p), lambda i, k, nz: (0, 0))
    else:
        s_spec = pl.BlockSpec((tk, fout_p), lambda i, k, nz: (k, 0))

    bf16, f32 = 2, 4
    out_bytes = jnp.dtype(out_dtype).itemsize
    need = (2 * tm * tk * bf16                                    # adj tile
            + (2 * n_pad * fout_p * bf16 if support_resident
               else 2 * tk * fout_p * bf16)                       # support
            + 2 * 8 * fout_p * f32                                # bias tile
            + 2 * tm * fout_p * out_bytes                         # output tile
            + tm * fout_p * f32)                                  # f32 accumulator

    kernel = functools.partial(_aggregate_kernel, epilogue=epilogue,
                               nclass=nclass, tk=tk,
                               support_resident=support_resident)
    return pl.pallas_call(
        kernel,
        out_shape=jax.ShapeDtypeStruct((n_pad, fout_p), out_dtype),
        grid_spec=pltpu.PrefetchScalarGridSpec(
            num_scalar_prefetch=1,                 # nz_tiles -> SMEM
            grid=grid,
            in_specs=[
                pl.BlockSpec((tm, tk), lambda i, k, nz: (i, k)),     # adj tile
                s_spec,                                              # support
                pl.BlockSpec((1, fout_p), lambda i, k, nz: (0, 0)),  # bias
            ],
            out_specs=pl.BlockSpec((tm, fout_p), lambda i, k, nz: (i, 0)),
            scratch_shapes=[pltpu.VMEM((tm, fout_p), jnp.float32)],
        ),
        compiler_params=pltpu.CompilerParams(
            dimension_semantics=("parallel", "arbitrary"),
            vmem_limit_bytes=_vmem_limit_bytes(need),
        ),
    )(nz_tiles, adj_p, support, b_p)


# ----------------------------------------------------------------------------
# Full forward
# ----------------------------------------------------------------------------
def gcn_forward(x, adj, w1, b1, w2, b2, *, tm=512, tk=512):
    """log_softmax(adj @ (relu(adj @ (x@W1) + b1) @ W2) + b2, axis=1)."""
    n, nfeat = x.shape
    nhid = w1.shape[1]
    nclass = w2.shape[1]

    # Lane-dense padding of every MXU-facing dimension.
    n_block = _round_up(n, _LANE)
    tm = min(tm, n_block)
    tk = min(tk, n_block)
    # v7x megacore: keep >= 2 row tiles on the parallel axis when possible.
    if n_block // tm < 2 and tm > _LANE:
        tm = max(_LANE, _round_up(n_block // 2, _LANE))
        tk = min(tk, tm)
    n_pad = _round_up(n, math.lcm(tm, tk))
    nfeat_p = _round_up(nfeat, _LANE)
    nhid_p = _round_up(nhid, _LANE)
    nclass_p = _round_up(nclass, _LANE)

    # bf16 matmul operands (f32 accumulation + f32 epilogues inside kernels).
    x_p = _pad2(x, n_pad, nfeat_p, jnp.bfloat16)
    adj_p = _pad2(adj, n_pad, n_pad, jnp.bfloat16)
    w1_p = _pad2(w1, nfeat_p, nhid_p, jnp.bfloat16)
    w2_p = _pad2(w2, nhid_p, nclass_p, jnp.bfloat16)
    b1_p = _pad2(b1, 1, nhid_p, jnp.float32)
    b2_p = _pad2(b2, 1, nclass_p, jnp.float32)

    # Per-(row-tile, k-tile) nonzero map of adj; all-zero tiles skip compute.
    n_i, n_k = n_pad // tm, n_pad // tk
    nz_tiles = jnp.any(adj_p.reshape(n_i, tm, n_k, tk) != 0,
                       axis=(1, 3)).astype(jnp.int32)
    # TODO(synk): the full block-sparsity win needs block-CSR scalar-prefetch
    # index_maps so zero adj tiles are never DMA'd; here they are fetched but
    # not computed on.

    # Layer 1: h1 = relu(adj @ (x @ W1) + b1), stored bf16.
    s1 = _feature_matmul(x_p, w1_p, tm=tm)
    h1 = _aggregate(nz_tiles, adj_p, s1, b1_p, epilogue="relu", nclass=None,
                    tm=tm, tk=tk, out_dtype=jnp.bfloat16)

    # TODO(synk): F.dropout(x, p, training=self.training) is identity in eval
    # mode; a training path would use pltpu.prng_seed / pltpu.prng_random_bits.

    # Layer 2: log_softmax(adj @ (h1 @ W2) + b2), f32 output, padded classes masked.
    s2 = _feature_matmul(h1, w2_p, tm=tm)
    logp = _aggregate(nz_tiles, adj_p, s2, b2_p, epilogue="log_softmax",
                      nclass=nclass, tm=tm, tk=tk, out_dtype=jnp.float32)
    return logp[:n, :nclass]


def init_params(key, nfeat, nhid, nclass):
    # Deterministic init mimicking GraphConvolution's uniform(-stdv, stdv).
    k1, k2, k3, k4 = jax.random.split(key, 4)
    stdv1 = 1.0 / math.sqrt(nhid)
    stdv2 = 1.0 / math.sqrt(nclass)
    w1 = jax.random.uniform(k1, (nfeat, nhid), jnp.float32, -stdv1, stdv1)
    b1 = jax.random.uniform(k2, (1, nhid), jnp.float32, -stdv1, stdv1)
    w2 = jax.random.uniform(k3, (nhid, nclass), jnp.float32, -stdv2, stdv2)
    b2 = jax.random.uniform(k4, (1, nclass), jnp.float32, -stdv2, stdv2)
    return w1, b1, w2, b2


if __name__ == "__main__":
    # Small synthetic graph: N nodes, nfeat input features.
    N, nfeat, nhid, nclass = 8, 16, 32, 8

    key = jax.random.PRNGKey(0)
    kx, kadj, kparams = jax.random.split(key, 3)

    x = jax.random.normal(kx, (N, nfeat), jnp.float32)

    # Symmetric normalized adjacency with self-loops (typical GCN input).
    a = (jax.random.uniform(kadj, (N, N)) > 0.6).astype(jnp.float32)
    a = jnp.maximum(a, a.T) + jnp.eye(N, dtype=jnp.float32)
    deg = jnp.sum(a, axis=1)
    d_inv_sqrt = 1.0 / jnp.sqrt(deg)
    adj = a * d_inv_sqrt[:, None] * d_inv_sqrt[None, :]

    w1, b1, w2, b2 = init_params(kparams, nfeat, nhid, nclass)

    out = gcn_forward(x, adj, w1, b1, w2, b2)
    jax.block_until_ready(out)

    # Pure-JAX f32 reference for correctness (bf16 operands -> loose tolerance).
    def ref_forward(x, adj, w1, b1, w2, b2):
        h = jnp.maximum(adj @ (x @ w1) + b1, 0.0)
        logits = adj @ (h @ w2) + b2
        return jax.nn.log_softmax(logits, axis=1)

    ref = ref_forward(x, adj, w1, b1, w2, b2)

    assert out.shape == (N, nclass)
    # rows of log_softmax should exp-sum to 1
    assert jnp.allclose(jnp.sum(jnp.exp(out), axis=1), 1.0, atol=1e-4)
    assert jnp.allclose(out, ref, atol=8e-2, rtol=5e-2)

    print("KERNEL_OK")
</pallas_src>

<mosaic_0001>
module attributes {stable_mosaic.version = 11 : i64} {
  func.func @_support_kernel(%arg0: i32, %arg1: memref<128x128xbf16, #tpu.memory_space<vmem>>, %arg2: memref<128x128xbf16, #tpu.memory_space<vmem>>, %arg3: memref<128x128xbf16, #tpu.memory_space<vmem>>) attributes {dimension_semantics = [#tpu.dimension_semantics<parallel>], iteration_bounds = array<i64: 1>, scalar_prefetch = 0 : i64, scratch_operands = 0 : i64, tpu.core_type = #tpu.core_type<tc>, window_params = [{transform_indices = @transform_0, window_bounds = array<i64: 128, 128>}, {pipeline_mode = #tpu.pipeline_mode<synchronous>, transform_indices = @transform_1, window_bounds = array<i64: 128, 128>}, {transform_indices = @transform_2, window_bounds = array<i64: 128, 128>}]} {
    %c0 = arith.constant 0 : index
    %c0_0 = arith.constant 0 : index
    %0 = vector.load %arg1[%c0, %c0_0] : memref<128x128xbf16, #tpu.memory_space<vmem>>, vector<128x128xbf16>
    %c0_1 = arith.constant 0 : index
    %c0_2 = arith.constant 0 : index
    %1 = vector.load %arg2[%c0_1, %c0_2] : memref<128x128xbf16, #tpu.memory_space<vmem>>, vector<128x128xbf16>
    %cst = arith.constant dense<0.000000e+00> : vector<128x128xf32>
    %2 = tpu.matmul %0, %1, %cst {dimension_numbers = #tpu.dot_dimension_numbers<[1], [0], [0], [1], [0, 0, 1, 1], [], []>} : vector<128x128xbf16>, vector<128x128xbf16>, vector<128x128xf32> -> vector<128x128xf32>
    %3 = arith.truncf %2 : vector<128x128xf32> to vector<128x128xbf16>
    %c0_3 = arith.constant 0 : index
    %c0_4 = arith.constant 0 : index
    %4 = vector.load %arg3[%c0_3, %c0_4] : memref<128x128xbf16, #tpu.memory_space<vmem>>, vector<128x128xbf16>
    tpu.vector_store %arg3[%c0_3, %c0_4], %3 {strides = array<i32>} : memref<128x128xbf16, #tpu.memory_space<vmem>>, vector<128x128xbf16>,
    return
  }
  func.func @transform_0(%arg0: i32) -> (i32, i32) {
    %c0_i32 = arith.constant 0 : i32
    %c0_i32_0 = arith.constant 0 : i32
    return %arg0, %c0_i32 : i32, i32
  }
  func.func @transform_1(%arg0: i32) -> (i32, i32) {
    %c0_i32 = arith.constant 0 : i32
    %c0_i32_0 = arith.constant 0 : i32
    %c0_i32_1 = arith.constant 0 : i32
    return %c0_i32, %c0_i32_0 : i32, i32
  }
  func.func @transform_2(%arg0: i32) -> (i32, i32) {
    %c0_i32 = arith.constant 0 : i32
    %c0_i32_0 = arith.constant 0 : i32
    return %arg0, %c0_i32 : i32, i32
  }
}

</mosaic_0001>

<bundles_post_ra>
// kernel: tpu_custom_call.1
= control target key start
LH: loop header
LB: loop body
LE: loop exit
PB: predicated region body
PF: predicated region fallthrough
CT: control target
= control target key end

     0   :  { %7 = vsyncpa [#allocation3], 0  ;;  %s648_s0 = inlined_call_operand.hbm [shape: bf16[128,128], index: 0, kind: input, shape index: {}]   ;;  %s649_s1 = inlined_call_operand.hbm [shape: bf16[128,128], index: 1, kind: input, shape index: {}]   ;;  %s650_s2 = inlined_call_operand.hbm [shape: bf16[128,128], index: 2, kind: output, shape index: {}]  }
   0x1   :  { %8 = vsyncpa [#allocation6], 0 }
   0x2   :  { %9 = vsyncpa [#allocation4], 0  ;;  %s610_s9 = smov [#allocation2]  }
   0x3   :  { %s15_s10 = sshll.u32 %s610_s9, 4  ;;  %s16_s10 = int_to_ptr.vmem [resolvable:$true] %s15_s10 }
   0x4   :  { %s552_s11 = scalar_lea.vmem %s16_s10, 1024  ;;  %p557_p1 = scmp.lt.s32.totalorder %s16_s10, %s16_s10 }
   0x5   :  { %p553_p0 = scmp.ne.s32.totalorder %s16_s10, %s552_s11  ;;  %p558_p2 = scmp.lt.s32.totalorder %s552_s11, %s552_s11 }
   0x7   :  { %p559_p3 = por %p558_p2, %p557_p1 }
   0x9   :  { %p560_p4 = pnand %p559_p3, %p553_p0 }
   0xb   :  { %563 = shalt.err (!%p560_p4)
}
   0xc   :  { %s611_s12 = smov 64   ;;  %s612_s13 = smov 4  }
   0xd   :  { %21 = dma.hbm_to_vmem [thread:$0]  %s648_s0, 1024, %s16_s10, [#allocation3], %s611_s12, %s611_s12, %s612_s13  }
   0xe   :  { %s613_s16 = smov [#allocation5]  }
   0xf   :  { %s27_s17 = sshll.u32 %s613_s16, 4  ;;  %s28_s17 = int_to_ptr.vmem [resolvable:$true] %s27_s17 }
  0x10   :  { %s572_s18 = scalar_lea.vmem %s28_s17, 1024  ;;  %p577_p6 = scmp.lt.s32.totalorder %s28_s17, %s28_s17 }
  0x11   :  { %p573_p5 = scmp.ne.s32.totalorder %s28_s17, %s572_s18  ;;  %p578_p7 = scmp.lt.s32.totalorder %s572_s18, %s572_s18 }
  0x13   :  { %p579_p8 = por %p578_p7, %p577_p6 }
  0x15   :  { %p580_p9 = pnand %p579_p8, %p573_p5 }
  0x17   :  { %583 = shalt.err (!%p580_p9)
}
  0x18   :  { %33 = dma.hbm_to_vmem [thread:$0]  %s649_s1, 1024, %s28_s17, [#allocation6], %s611_s12, %s611_s12, %s612_s13  }
  0x19   :  { %604 = dma.done.wait [#allocation3], 1024  }
  0x1a   :  { %605 = vsyncadd [#allocation3], 4294966272 }
  0x1b   :  { %606 = dma.done.wait [#allocation6], 1024  }
  0x1c   :  { %607 = vsyncadd [#allocation6], 4294966272  ;;  %v528_v0 = vld [vmem:[#allocation5 + $0x38] sm:$0xff]   ;;  %v529_v1 = vld [vmem:[#allocation5 + $0x30] sm:$0xff]   ;;  %s614_s0 = smov [#allocation7]  }
  0x1d   :  { %475 = vmatprep.subr.bf16.mxu0 %v528_v0  ;;  %507 = vmatprep.subr.bf16.mxu1 %v528_v0  ;;  %v530_v2 = vld [vmem:[#allocation5 + $0x28] sm:$0xff]   ;;  %v531_v3 = vld [vmem:[#allocation5 + $0x20] sm:$0xff]   ;;  %v532_v6 = vld [vmem:[#allocation5 + $0x18] sm:$0xff]   ;;  %s351_s1 = sshll.u32 %s614_s0, 4  ;;  %s352_s1 = int_to_ptr.vmem [resolvable:$true] %s351_s1 }
  0x1e   :  { %476 = vmatpush3.bf16.msra.mxu0 %v528_v0  ;;  %515 = vmatpush3.bf16.msra.mxu1 %v528_v0  ;;  %v536_v4 = vld [vmem:[#allocation2] sm:$0xff]   ;;  %v533_v7 = vld [vmem:[#allocation5 + $0x10] sm:$0xff]   ;;  %v534_v8 = vld [vmem:[#allocation5 + $0x8] sm:$0xff]   ;;  %s584_s21 = scalar_lea.vmem %s352_s1, 1024  ;;  %p589_p11 = scmp.lt.s32.totalorder %s352_s1, %s352_s1 }
  0x1f   :  { %477 = vmatprep.subr.bf16.mxu0 %v529_v1  ;;  %508 = vmatprep.subr.bf16.mxu1 %v529_v1  ;;  %v537_v5 = vld [vmem:[#allocation2 + $0x20] sm:$0xff]   ;;  %v538_v10 = vld [vmem:[#allocation2 + $0x8] sm:$0xff]   ;;  %v540_v12 = vld [vmem:[#allocation2 + $0x10] sm:$0xff]   ;;  %p585_p10 = scmp.ne.s32.totalorder %s352_s1, %s584_s21  ;;  %p590_p12 = scmp.lt.s32.totalorder %s584_s21, %s584_s21 }
  0x20   :  { %491 = vmatprep.mubr.bf16.mxu0 %v536_v4  ;;  %499 = vmatprep.mubr.bf16.mxu1 %v537_v5  ;;  %v535_v9 = vld [vmem:[#allocation5] sm:$0xff]   ;;  %v539_v11 = vld [vmem:[#allocation2 + $0x28] sm:$0xff]   ;;  %v541_v13 = vld [vmem:[#allocation2 + $0x30] sm:$0xff]  }
  0x21   :  { %v542_v14 = vld [vmem:[#allocation2 + $0x18] sm:$0xff]   ;;  %p591_p13 = por %p590_p12, %p589_p11 }
  0x22   :  { %478 = vmatpush3.bf16.msra.mxu0 %v529_v1  ;;  %516 = vmatpush3.bf16.msra.mxu1 %v529_v1  ;;  %v543_v15 = vld [vmem:[#allocation2 + $0x38] sm:$0xff]  }
  0x23   :  { %479 = vmatprep.subr.bf16.mxu0 %v530_v2  ;;  %509 = vmatprep.subr.bf16.mxu1 %v530_v2  ;;  %p592_p0 = pnand %p591_p13, %p585_p10 }
  0x26   :  { %480 = vmatpush3.bf16.msra.mxu0 %v530_v2  ;;  %517 = vmatpush3.bf16.msra.mxu1 %v530_v2 }
  0x27   :  { %481 = vmatprep.subr.bf16.mxu0 %v531_v3  ;;  %510 = vmatprep.subr.bf16.mxu1 %v531_v3 }
  0x2a   :  { %482 = vmatpush3.bf16.msra.mxu0 %v531_v3  ;;  %518 = vmatpush3.bf16.msra.mxu1 %v531_v3 }
  0x2b   :  { %483 = vmatprep.subr.bf16.mxu0 %v532_v6  ;;  %511 = vmatprep.subr.bf16.mxu1 %v532_v6 }
  0x2e   :  { %484 = vmatpush3.bf16.msra.mxu0 %v532_v6  ;;  %519 = vmatpush3.bf16.msra.mxu1 %v532_v6 }
  0x2f   :  { %485 = vmatprep.subr.bf16.mxu0 %v533_v7  ;;  %512 = vmatprep.subr.bf16.mxu1 %v533_v7 }
  0x32   :  { %486 = vmatpush3.bf16.msra.mxu0 %v533_v7  ;;  %520 = vmatpush3.bf16.msra.mxu1 %v533_v7 }
  0x33   :  { %487 = vmatprep.subr.bf16.mxu0 %v534_v8  ;;  %513 = vmatprep.subr.bf16.mxu1 %v534_v8 }
  0x36   :  { %488 = vmatpush3.bf16.msra.mxu0 %v534_v8  ;;  %521 = vmatpush3.bf16.msra.mxu1 %v534_v8 }
  0x37   :  { %489 = vmatprep.subr.bf16.mxu0 %v535_v9  ;;  %514 = vmatprep.subr.bf16.mxu1 %v535_v9 }
  0x3a   :  { %490 = vmatpush3.bf16.msra.mxu0 %v535_v9  ;;  %522 = vmatpush3.bf16.msra.mxu1 %v535_v9 }
  0x3d   :  { %492 = vmatmul.mubr.bf16.vlgmr.msra.gmra.mxu0 %v538_v10  ;;  %500 = vmatmul.mubr.bf16.vlgmr.msra.gmra.mxu1 %v539_v11 }
  0x3e   :  { %495 = vmatprep.mubr.bf16.mxu0 %v540_v12  ;;  %503 = vmatprep.mubr.bf16.mxu1 %v541_v13 }
  0x45   :  { %496 = vmatmul.mubr.bf16.gmra.mxu0 %v542_v14  ;;  %504 = vmatmul.mubr.bf16.gmra.mxu1 %v543_v15 }
  0xfd   :  { %v493_v16 = vpop.f32.mrf.mxu0  ;;  %v501_v17 = vpop.f32.mrf.mxu1 }
  0xff   :  { %v203_v18 = vpop.f32.mrf.mxu0  ;;  %v235_v19 = vpop.f32.mrf.mxu1 }
 0x101   :  { %v494_v20 = vpop.f32.mrf.mxu0  ;;  %v502_v21 = vpop.f32.mrf.mxu1 }
 0x102   :  { %v420_v22 = vpack.c.bf16 %v494_v20, %v493_v16  ;;  %v440_v23 = vpack.c.bf16 %v502_v21, %v501_v17 }
 0x103   :  { %v206_v24 = vpop.f32.mrf.mxu0  ;;  %v238_v25 = vpop.f32.mrf.mxu1 }
 0x104   :  { %452 = vst [vmem:[#allocation7 + $0x8] sm:$0xff] %v420_v22   ;;  %456 = vst [vmem:[#allocation7 + $0x28] sm:$0xff] %v440_v23   ;;  %v415_v26 = vpack.c.bf16 %v206_v24, %v203_v18  ;;  %v435_v27 = vpack.c.bf16 %v238_v25, %v235_v19 }
 0x105   :  { %v497_v28 = vpop.f32.mrf.mxu0  ;;  %v505_v29 = vpop.f32.mrf.mxu1 }
 0x106   :  { %416 = vst [vmem:[#allocation7] sm:$0xff] %v415_v26   ;;  %455 = vst [vmem:[#allocation7 + $0x20] sm:$0xff] %v435_v27  }
 0x107   :  { %v219_v30 = vpop.f32.mrf.mxu0  ;;  %v251_v31 = vpop.f32.mrf.mxu1 }
 0x109   :  { %v498_v32 = vpop.f32.mrf.mxu0  ;;  %v506_v33 = vpop.f32.mrf.mxu1 }
 0x10a   :  { %v430_v34 = vpack.c.bf16 %v498_v32, %v497_v28  ;;  %v450_v35 = vpack.c.bf16 %v506_v33, %v505_v29 }
 0x10b   :  { %v222_v36 = vpop.f32.mrf.mxu0  ;;  %v254_v37 = vpop.f32.mrf.mxu1 }
 0x10c   :  { %454 = vst [vmem:[#allocation7 + $0x18] sm:$0xff] %v430_v34   ;;  %458 = vst [vmem:[#allocation7 + $0x38] sm:$0xff] %v450_v35   ;;  %v425_v38 = vpack.c.bf16 %v222_v36, %v219_v30  ;;  %v445_v39 = vpack.c.bf16 %v254_v37, %v251_v31 }
 0x10e   :  { %453 = vst [vmem:[#allocation7 + $0x10] sm:$0xff] %v425_v38   ;;  %457 = vst [vmem:[#allocation7 + $0x30] sm:$0xff] %v445_v39  }
 0x10f   :  { %595 = shalt.err (!%p592_p0)
}
 0x110   :  { %357 = dma.vmem_to_hbm [thread:$0]  %s352_s1, 1024, %s650_s2, [#allocation4], %s611_s12, %s611_s12, %s612_s13  }
 0x111   :  { %608 = dma.done.wait [#allocation4], 1024  }
 0x112   :  { %609 = vsyncadd [#allocation4], 4294966272 }
 0x113   :  { %361 = vsyncpa [#allocation3], 1 }
 0x114   :  { %362 = vsyncpa [#allocation6], 1 }
 0x115   :  { %363 = vsyncpa [#allocation4], 1 }

</bundles_post_ra>
